<compile_context>
chip_gen: v6e
topology: v6e:2x2x1
jax: 0.10.0
libtpu: 0.0.40
codegen_flags: <defaults>
</compile_context>

<pallas_src>
import functools
import math

import jax
import jax.numpy as jnp
import numpy as np
from jax import lax
from jax.experimental import pallas as pl
from jax.experimental.pallas import tpu as pltpu


def _round_up(x, m):
    return (x + m - 1) // m * m


# ----------------------------------------------------------------------------- #
# Tiled linear kernel:  out = x @ w + b  (+ optional residual)
# ----------------------------------------------------------------------------- #
def _linear_kernel(x_ref, w_ref, b_ref, *rest, n_k, has_residual):
    if has_residual:
        r_ref, o_ref, acc_ref = rest
    else:
        o_ref, acc_ref = rest

    @pl.when(pl.program_id(2) == 0)
    def _():
        acc_ref[...] = jnp.zeros_like(acc_ref)

    acc_ref[...] += jnp.dot(
        x_ref[...], w_ref[...], preferred_element_type=jnp.float32
    )

    @pl.when(pl.program_id(2) == n_k - 1)
    def _():
        out = acc_ref[...] + b_ref[...]
        if has_residual:
            out = out + r_ref[...]
        o_ref[...] = out.astype(o_ref.dtype)


def pallas_linear(x, w, b, residual=None, *, tm=256, tn=256, tk=512):
    """x: (M, K) f32, w: (K, N) f32, b: (N,) f32, residual: (M, N) f32 or None."""
    M, K = x.shape
    N = w.shape[1]

    tm = min(tm, _round_up(M, 16))      # bf16 sublane-safe
    tn = min(tn, _round_up(N, 128))     # lane
    tk = min(tk, _round_up(K, 128))     # lane for x / sublane for w
    Mp, Np, Kp = _round_up(M, tm), _round_up(N, tn), _round_up(K, tk)
    n_k = Kp // tk

    xb = jnp.pad(x, ((0, Mp - M), (0, Kp - K))).astype(jnp.bfloat16)
    wb = jnp.pad(w, ((0, Kp - K), (0, Np - N))).astype(jnp.bfloat16)
    bb = jnp.pad(b.astype(jnp.float32), (0, Np - N)).reshape(1, Np)

    in_specs = [
        pl.BlockSpec((tm, tk), lambda i, j, k: (i, k)),
        pl.BlockSpec((tk, tn), lambda i, j, k: (k, j)),
        pl.BlockSpec((1, tn), lambda i, j, k: (0, j)),
    ]
    operands = [xb, wb, bb]
    has_residual = residual is not None
    if has_residual:
        rp = jnp.pad(residual.astype(jnp.float32), ((0, Mp - M), (0, Np - N)))
        in_specs.append(pl.BlockSpec((tm, tn), lambda i, j, k: (i, j)))
        operands.append(rp)

    out = pl.pallas_call(
        functools.partial(_linear_kernel, n_k=n_k, has_residual=has_residual),
        out_shape=jax.ShapeDtypeStruct((Mp, Np), jnp.float32),
        grid=(Mp // tm, Np // tn, n_k),
        in_specs=in_specs,
        out_specs=pl.BlockSpec((tm, tn), lambda i, j, k: (i, j)),
        scratch_shapes=[pltpu.VMEM((tm, tn), jnp.float32)],
        compiler_params=pltpu.CompilerParams(
            dimension_semantics=("parallel", "parallel", "arbitrary")
        ),
    )(*operands)
    return out[:M, :N]


# ----------------------------------------------------------------------------- #
# Row-tiled LayerNorm kernel
# ----------------------------------------------------------------------------- #
def _layernorm_kernel(x_ref, g_ref, b_ref, o_ref, *, eps):
    x = x_ref[...]                                           # (tm, D) f32
    mu = jnp.mean(x, axis=-1, keepdims=True)
    var = jnp.mean(jnp.square(x - mu), axis=-1, keepdims=True)
    o_ref[...] = (x - mu) * lax.rsqrt(var + eps) * g_ref[...] + b_ref[...]


def pallas_layernorm(x, g, b, eps=1e-5, *, tm=256):
    shape = x.shape
    D = shape[-1]
    x2 = x.reshape(-1, D).astype(jnp.float32)
    M = x2.shape[0]
    tm = min(tm, _round_up(M, 8))
    Mp = _round_up(M, tm)
    xp = jnp.pad(x2, ((0, Mp - M), (0, 0)))
    out = pl.pallas_call(
        functools.partial(_layernorm_kernel, eps=eps),
        out_shape=jax.ShapeDtypeStruct((Mp, D), jnp.float32),
        grid=(Mp // tm,),
        in_specs=[
            pl.BlockSpec((tm, D), lambda i: (i, 0)),
            pl.BlockSpec((1, D), lambda i: (0, 0)),
            pl.BlockSpec((1, D), lambda i: (0, 0)),
        ],
        out_specs=pl.BlockSpec((tm, D), lambda i: (i, 0)),
        compiler_params=pltpu.CompilerParams(dimension_semantics=("parallel",)),
    )(xp, g.reshape(1, D), b.reshape(1, D))
    return out[:M].reshape(shape)


# ----------------------------------------------------------------------------- #
# Attention kernel: one grid step per (batch, q-tile), all heads packed (lane-dense)
# ----------------------------------------------------------------------------- #
def _attention_kernel(q_ref, k_ref, v_ref, m_ref, o_ref, *, n_head, hd, causal, tq):
    qi = pl.program_id(1)
    Tk = k_ref.shape[1]
    mask = m_ref[0]                                          # (1, Tk) f32
    neg = jnp.float32(-1e30)                                 # finite: no NaN rows
    if causal:
        row = lax.broadcasted_iota(jnp.int32, (tq, Tk), 0) + qi * tq
        col = lax.broadcasted_iota(jnp.int32, (tq, Tk), 1)
        causal_ok = col <= row

    for h in range(n_head):                                  # static unroll
        lo = h * hd
        qh = q_ref[0, :, lo:lo + hd]                         # (tq, hd) bf16
        kh = k_ref[0, :, lo:lo + hd]                         # (Tk, hd) bf16
        vh = v_ref[0, :, lo:lo + hd]                         # (Tk, hd) bf16
        # contract head_dim directly -- no k.T relayout before the MXU
        s = lax.dot_general(qh, kh, (((1,), (1,)), ((), ())),
                            preferred_element_type=jnp.float32)      # (tq, Tk)
        s = jnp.where(mask > 0.5, s, neg)
        if causal:
            s = jnp.where(causal_ok, s, neg)
        mx = jnp.max(s, axis=-1, keepdims=True)
        p = jnp.exp(s - mx)
        denom = jnp.sum(p, axis=-1, keepdims=True)
        out = jnp.dot(p.astype(jnp.bfloat16), vh,
                      preferred_element_type=jnp.float32)            # (tq, hd)
        o_ref[0, :, lo:lo + hd] = out * pl.reciprocal(denom, approx=True)


def pallas_attention(q, k, v, pad_mask, *, n_head, causal, tq_tile=256):
    """q: (B, Tq, C), k/v: (B, Tk, C), pad_mask: (B, Tk) f32 (1=keep)."""
    B, Tq, C = q.shape
    Tk = k.shape[1]
    hd = C // n_head
    tq = min(tq_tile, _round_up(Tq, 16))
    Tqp = _round_up(Tq, tq)

    qb = jnp.pad(q, ((0, 0), (0, Tqp - Tq), (0, 0))).astype(jnp.bfloat16)
    kb = k.astype(jnp.bfloat16)
    vb = v.astype(jnp.bfloat16)
    m = pad_mask.astype(jnp.float32).reshape(B, 1, Tk)       # no per-head repeat

    out = pl.pallas_call(
        functools.partial(_attention_kernel, n_head=n_head, hd=hd,
                          causal=causal, tq=tq),
        out_shape=jax.ShapeDtypeStruct((B, Tqp, C), jnp.float32),
        grid=(B, Tqp // tq),
        in_specs=[
            pl.BlockSpec((1, tq, C), lambda b, i: (b, i, 0)),
            pl.BlockSpec((1, Tk, C), lambda b, i: (b, 0, 0)),
            pl.BlockSpec((1, Tk, C), lambda b, i: (b, 0, 0)),
            pl.BlockSpec((1, 1, Tk), lambda b, i: (b, 0, 0)),
        ],
        out_specs=pl.BlockSpec((1, tq, C), lambda b, i: (b, i, 0)),
        compiler_params=pltpu.CompilerParams(
            dimension_semantics=("parallel", "parallel")),
    )(qb, kb, vb, m)
    return out[:, :Tq, :]


# ----------------------------------------------------------------------------- #
# Model glue (reshapes / gathers / padding in plain JAX)
# ----------------------------------------------------------------------------- #
def conv1d_batched(x, w, b, *, stride, padding):
    """x: (B, C_in, L), w: (C_out, C_in, K), b: (C_out,) -> (B, C_out, L_out)."""
    B, C_in, L = x.shape
    C_out, _, K = w.shape
    L_out = (L + 2 * padding - K) // stride + 1
    xp = jnp.pad(x, ((0, 0), (0, 0), (padding, padding)))
    idx = jnp.arange(L_out) * stride
    cols = idx[:, None] + jnp.arange(K)[None, :]             # (L_out, K)
    patches = xp[:, :, cols]                                 # (B, C_in, L_out, K)
    patches = patches.transpose(0, 2, 1, 3).reshape(B * L_out, C_in * K)
    wf = w.reshape(C_out, C_in * K).T                        # (C_in*K, C_out)
    out = pallas_linear(patches, wf, b)                      # one batched matmul
    return out.reshape(B, L_out, C_out).transpose(0, 2, 1)


def multi_head_attention(p, k_in, q_in, v_in, *, n_head, causal,
                         pad_mask=None, residual=None):
    B, Tk, C = k_in.shape
    Tq = q_in.shape[1]
    hd = C // n_head
    scale = 1.0 / math.sqrt(hd)

    k = pallas_linear(k_in.reshape(B * Tk, C), p["k_w"], p["k_b"]).reshape(B, Tk, C)
    # fold 1/sqrt(hd) into the query projection (cheap (C,C) scale, not (Tq,Tk))
    q = pallas_linear(q_in.reshape(B * Tq, C), p["q_w"] * scale,
                      p["q_b"] * scale).reshape(B, Tq, C)
    v = pallas_linear(v_in.reshape(B * Tk, C), p["v_w"], p["v_b"]).reshape(B, Tk, C)

    if pad_mask is None:
        m = jnp.ones((B, Tk), jnp.float32)
    else:
        m = pad_mask.astype(jnp.float32)

    y = pallas_attention(q, k, v, m, n_head=n_head, causal=causal)  # (B, Tq, C)
    res = None if residual is None else residual.reshape(B * Tq, C)
    out = pallas_linear(y.reshape(B * Tq, C), p["o_w"], p["o_b"], residual=res)
    return out.reshape(B, Tq, C)


def mlp_block(p, x, residual):
    B, T, C = x.shape
    h = pallas_linear(x.reshape(B * T, C), p["fc1_w"], p["fc1_b"])
    # TODO(synk): exact-erf GELU kept in plain JAX (erf lowering inside Mosaic
    # kernels is not guaranteed); bias+GELU fc1 epilogue fusion left out.
    h = jax.nn.gelu(h, approximate=False)
    out = pallas_linear(h, p["fc2_w"], p["fc2_b"],
                        residual=residual.reshape(B * T, C))   # fused residual add
    return out.reshape(B, T, C)


def encoder_forward(p, x, *, n_head, hidden):
    # x: (B, n_mels, L) -- NCL, same as PyTorch Conv1d input (shared L per batch)
    B = x.shape[0]
    h = conv1d_batched(x, p["conv1_w"], p["conv1_b"], stride=1, padding=1)
    h = jax.nn.gelu(h, approximate=False)
    h = conv1d_batched(h, p["conv2_w"], p["conv2_b"], stride=2, padding=1)
    length = h.shape[-1]
    assert length <= hidden
    pad_len = hidden - length
    h = jnp.pad(h, ((0, 0), (0, 0), (0, pad_len)))           # (B, D, hidden)
    mask = jnp.concatenate([jnp.ones((length,), jnp.float32),
                            jnp.zeros((pad_len,), jnp.float32)])
    mask = jnp.broadcast_to(mask, (B, hidden))               # (B, N) key-pad mask

    x = h.transpose(0, 2, 1) + p["pos_emb"]                  # (B, N, D)
    for blk in p["blocks"]:
        q_ = pallas_layernorm(x, blk["ln1_g"], blk["ln1_b"])
        x = multi_head_attention(blk["attn"], q_, q_, q_, n_head=n_head,
                                 causal=False, pad_mask=mask, residual=x)
        x = mlp_block(blk["mlp"],
                      pallas_layernorm(x, blk["ln2_g"], blk["ln2_b"]), residual=x)
    return pallas_layernorm(x, p["ln_g"], p["ln_b"])


def decoder_forward(p, tokens, enc_out, *, n_head):
    B, T = tokens.shape
    x = jnp.take(p["tok_emb"], tokens, axis=0) + p["pos_emb"][:T]
    for blk in p["blocks"]:
        q_ = pallas_layernorm(x, blk["ln1_g"], blk["ln1_b"])
        x = multi_head_attention(blk["attn"], q_, q_, q_, n_head=n_head,
                                 causal=True, residual=x)
        # NOTE: original PyTorch module passes no key-padding mask to cross-attn.
        x = multi_head_attention(
            blk["cross"], enc_out,
            pallas_layernorm(x, blk["ln2_g"], blk["ln2_b"]), enc_out,
            n_head=n_head, causal=False, residual=x)
        x = mlp_block(blk["mlp"],
                      pallas_layernorm(x, blk["ln3_g"], blk["ln3_b"]), residual=x)
    x = pallas_layernorm(x, p["ln_g"], p["ln_b"])
    C = x.shape[-1]
    vocab = p["lm_w"].shape[1]
    logits = pallas_linear(x.reshape(B * T, C), p["lm_w"], p["lm_b"])
    return logits.reshape(B, T, vocab).astype(jnp.float32)


def transformer_forward(params, enc_input, dec_tokens, cfg):
    enc_out = encoder_forward(
        params["encoder"], enc_input, n_head=cfg["n_audio_head"],
        hidden=cfg["encoder_hidden"])
    return decoder_forward(params["decoder"], dec_tokens, enc_out,
                           n_head=cfg["n_text_head"])


# ----------------------------------------------------------------------------- #
# Deterministic parameter init (synthetic weights, matching module shapes)
# ----------------------------------------------------------------------------- #
def sinusoids(length, channels, max_timescale=10000):
    assert channels % 2 == 0
    log_ts_inc = np.log(max_timescale) / (channels // 2 - 1)
    inv_timescales = np.exp(-log_ts_inc * np.arange(channels // 2))
    scaled_time = np.arange(length)[:, None] * inv_timescales[None, :]
    return jnp.asarray(
        np.concatenate([np.sin(scaled_time), np.cos(scaled_time)], axis=1),
        jnp.float32)


def _init_linear(key, fan_in, fan_out):
    w = jax.random.normal(key, (fan_in, fan_out), jnp.float32) * 0.02
    b = jnp.zeros((fan_out,), jnp.float32)
    return w, b


def _init_mha(key, n_embd):
    ks = jax.random.split(key, 4)
    p = {}
    for name, k in zip(["k", "q", "v", "o"], ks):
        w, b = _init_linear(k, n_embd, n_embd)
        p[f"{name}_w"], p[f"{name}_b"] = w, b
    return p


def _init_mlp(key, n_embd):
    k1, k2 = jax.random.split(key)
    w1, b1 = _init_linear(k1, n_embd, 4 * n_embd)
    w2, b2 = _init_linear(k2, 4 * n_embd, n_embd)
    return {"fc1_w": w1, "fc1_b": b1, "fc2_w": w2, "fc2_b": b2}


def _ln_params(d):
    return jnp.ones((d,), jnp.float32), jnp.zeros((d,), jnp.float32)


def init_params(key, cfg):
    d_a, d_t = cfg["n_audio_embd"], cfg["n_text_embd"]
    keys = jax.random.split(key, 8)

    enc = {}
    enc["conv1_w"] = jax.random.normal(keys[0], (d_a, cfg["n_mels"], 3),
                                       jnp.float32) * 0.02
    enc["conv1_b"] = jnp.zeros((d_a,), jnp.float32)
    enc["conv2_w"] = jax.random.normal(keys[1], (d_a, d_a, 3), jnp.float32) * 0.02
    enc["conv2_b"] = jnp.zeros((d_a,), jnp.float32)
    enc["pos_emb"] = sinusoids(cfg["encoder_hidden"], d_a)
    enc["blocks"] = []
    for bk in jax.random.split(keys[2], cfg["n_audio_layer"]):
        k1, k2 = jax.random.split(bk)
        g1, b1 = _ln_params(d_a)
        g2, b2 = _ln_params(d_a)
        enc["blocks"].append({
            "attn": _init_mha(k1, d_a), "mlp": _init_mlp(k2, d_a),
            "ln1_g": g1, "ln1_b": b1, "ln2_g": g2, "ln2_b": b2})
    enc["ln_g"], enc["ln_b"] = _ln_params(d_a)

    dec = {}
    dec["tok_emb"] = jax.random.normal(keys[3], (cfg["vocab_size"], d_t),
                                       jnp.float32) * 0.02
    dec["pos_emb"] = jnp.zeros((cfg["n_text_ctx"], d_t), jnp.float32)  # torch.zeros
    # pre-transpose tied logits weight once (hoisted out of the forward hot path)
    dec["lm_w"] = dec["tok_emb"].T
    dec["lm_b"] = jnp.zeros((cfg["vocab_size"],), jnp.float32)
    dec["blocks"] = []
    for bk in jax.random.split(keys[4], cfg["n_text_layer"]):
        k1, k2, k3 = jax.random.split(bk, 3)
        g1, b1 = _ln_params(d_t)
        g2, b2 = _ln_params(d_t)
        g3, b3 = _ln_params(d_t)
        dec["blocks"].append({
            "attn": _init_mha(k1, d_t), "cross": _init_mha(k2, d_t),
            "mlp": _init_mlp(k3, d_t),
            "ln1_g": g1, "ln1_b": b1, "ln2_g": g2, "ln2_b": b2,
            "ln3_g": g3, "ln3_b": b3})
    dec["ln_g"], dec["ln_b"] = _ln_params(d_t)

    return {"encoder": enc, "decoder": dec}


# ----------------------------------------------------------------------------- #
if __name__ == "__main__":
    cfg = dict(
        n_mels=8,
        encoder_hidden=16,
        n_audio_layer=2,
        n_audio_embd=32,
        n_audio_head=4,
        vocab_size=64,
        n_text_ctx=16,
        n_text_layer=2,
        n_text_embd=32,
        n_text_head=4,
    )

    root = jax.random.PRNGKey(0)
    k_param, k_enc, k_dec = jax.random.split(root, 3)

    params = init_params(k_param, cfg)

    # Encoder input: (B, n_mels, L_audio) NCL; decoder input: (B, T_text) int tokens.
    enc_input = jax.random.normal(k_enc, (2, cfg["n_mels"], 24), jnp.float32)
    dec_input = jax.random.randint(k_dec, (2, 8), 0, cfg["vocab_size"], jnp.int32)

    logits = transformer_forward(params, enc_input, dec_input, cfg)
    logits = jax.block_until_ready(logits)

    assert logits.shape == (2, 8, cfg["vocab_size"])
    assert logits.dtype == jnp.float32
    assert bool(jnp.all(jnp.isfinite(logits)))
    print("KERNEL_OK")
</pallas_src>

<mosaic_0001>
module attributes {stable_mosaic.version = 11 : i64} {
  func.func @_linear_kernel(%arg0: i32, %arg1: i32, %arg2: i32, %arg3: memref<48x128xbf16, #tpu.memory_space<vmem>>, %arg4: memref<128x128xbf16, #tpu.memory_space<vmem>>, %arg5: memref<1x128xf32, #tpu.memory_space<vmem>>, %arg6: memref<48x128xf32, #tpu.memory_space<vmem>>, %arg7: memref<48x128xf32, #tpu.memory_space<vmem>>) attributes {dimension_semantics = [#tpu.dimension_semantics<parallel>, #tpu.dimension_semantics<parallel>, #tpu.dimension_semantics<arbitrary>], iteration_bounds = array<i64: 1, 1, 1>, scalar_prefetch = 0 : i64, scratch_operands = 1 : i64, tpu.core_type = #tpu.core_type<tc>, window_params = [{transform_indices = @transform_0, window_bounds = array<i64: 48, 128>}, {transform_indices = @transform_1, window_bounds = array<i64: 128, 128>}, {transform_indices = @transform_2, window_bounds = array<i64: 1, 128>}, {transform_indices = @transform_3, window_bounds = array<i64: 48, 128>}]} {
    %c0_i32 = arith.constant 0 : i32
    %0 = arith.cmpi eq, %arg2, %c0_i32 : i32
    %1 = arith.extui %0 : i1 to i32
    %c0_i32_0 = arith.constant 0 : i32
    %2 = arith.cmpi ne, %1, %c0_i32_0 : i32
    scf.if %2 {
      %cst_10 = arith.constant 0.000000e+00 : f32
      %12 = vector.broadcast %cst_10 : f32 to vector<48x128xf32>
      %c0_11 = arith.constant 0 : index
      %c0_12 = arith.constant 0 : index
      %13 = vector.load %arg7[%c0_11, %c0_12] : memref<48x128xf32, #tpu.memory_space<vmem>>, vector<48x128xf32>
      tpu.vector_store %arg7[%c0_11, %c0_12], %12 {strides = array<i32>} : memref<48x128xf32, #tpu.memory_space<vmem>>, vector<48x128xf32>,
    } else {
    }
    %c0 = arith.constant 0 : index
    %c0_1 = arith.constant 0 : index
    %3 = vector.load %arg7[%c0, %c0_1] : memref<48x128xf32, #tpu.memory_space<vmem>>, vector<48x128xf32>
    %c0_2 = arith.constant 0 : index
    %c0_3 = arith.constant 0 : index
    %4 = vector.load %arg3[%c0_2, %c0_3] : memref<48x128xbf16, #tpu.memory_space<vmem>>, vector<48x128xbf16>
    %c0_4 = arith.constant 0 : index
    %c0_5 = arith.constant 0 : index
    %5 = vector.load %arg4[%c0_4, %c0_5] : memref<128x128xbf16, #tpu.memory_space<vmem>>, vector<128x128xbf16>
    %cst = arith.constant dense<0.000000e+00> : vector<48x128xf32>
    %6 = tpu.matmul %4, %5, %cst {dimension_numbers = #tpu.dot_dimension_numbers<[1], [0], [0], [1], [0, 0, 1, 1], [], []>} : vector<48x128xbf16>, vector<128x128xbf16>, vector<48x128xf32> -> vector<48x128xf32>
    %7 = arith.addf %3, %6 : vector<48x128xf32>
    %c0_6 = arith.constant 0 : index
    %c0_7 = arith.constant 0 : index
    %8 = vector.load %arg7[%c0_6, %c0_7] : memref<48x128xf32, #tpu.memory_space<vmem>>, vector<48x128xf32>
    tpu.vector_store %arg7[%c0_6, %c0_7], %7 {strides = array<i32>} : memref<48x128xf32, #tpu.memory_space<vmem>>, vector<48x128xf32>,
    %c0_i32_8 = arith.constant 0 : i32
    %9 = arith.cmpi eq, %arg2, %c0_i32_8 : i32
    %10 = arith.extui %9 : i1 to i32
    %c0_i32_9 = arith.constant 0 : i32
    %11 = arith.cmpi ne, %10, %c0_i32_9 : i32
    scf.if %11 {
      %c0_10 = arith.constant 0 : index
      %c0_11 = arith.constant 0 : index
      %12 = vector.load %arg7[%c0_10, %c0_11] : memref<48x128xf32, #tpu.memory_space<vmem>>, vector<48x128xf32>
      %c0_12 = arith.constant 0 : index
      %c0_13 = arith.constant 0 : index
      %13 = vector.load %arg5[%c0_12, %c0_13] : memref<1x128xf32, #tpu.memory_space<vmem>>, vector<1x128xf32>
      %14 = vector.broadcast %13 : vector<1x128xf32> to vector<48x128xf32>
      %15 = arith.addf %12, %14 : vector<48x128xf32>
      %c0_14 = arith.constant 0 : index
      %c0_15 = arith.constant 0 : index
      %16 = vector.load %arg6[%c0_14, %c0_15] : memref<48x128xf32, #tpu.memory_space<vmem>>, vector<48x128xf32>
      tpu.vector_store %arg6[%c0_14, %c0_15], %15 {strides = array<i32>} : memref<48x128xf32, #tpu.memory_space<vmem>>, vector<48x128xf32>,
    } else {
    }
    return
  }
  func.func @transform_0(%arg0: i32, %arg1: i32, %arg2: i32) -> (i32, i32) {
    %c0_i32 = arith.constant 0 : i32
    return %arg0, %arg2 : i32, i32
  }
  func.func @transform_1(%arg0: i32, %arg1: i32, %arg2: i32) -> (i32, i32) {
    %c0_i32 = arith.constant 0 : i32
    return %arg2, %arg1 : i32, i32
  }
  func.func @transform_2(%arg0: i32, %arg1: i32, %arg2: i32) -> (i32, i32) {
    %c0_i32 = arith.constant 0 : i32
    %c0_i32_0 = arith.constant 0 : i32
    return %c0_i32, %arg1 : i32, i32
  }
  func.func @transform_3(%arg0: i32, %arg1: i32, %arg2: i32) -> (i32, i32) {
    %c0_i32 = arith.constant 0 : i32
    return %arg0, %arg1 : i32, i32
  }
}

</mosaic_0001>

<bundles_post_ra>
// kernel: tpu_custom_call.1
= control target key start
LH: loop header
LB: loop body
LE: loop exit
PB: predicated region body
PF: predicated region fallthrough
CT: control target
= control target key end

     0   :  { %8 = vsyncpa [#allocation4], 0  ;;  %s460_s0 = inlined_call_operand.hbm [shape: bf16[48,128], index: 0, kind: input, shape index: {}]   ;;  %s461_s1 = inlined_call_operand.hbm [shape: bf16[128,128], index: 1, kind: input, shape index: {}]   ;;  %s462_s2 = inlined_call_operand.vmem [shape: f32[1,128], index: 2, kind: input, shape index: {}]   ;;  %s463_s3 = inlined_call_operand.hbm [shape: f32[48,128], index: 3, kind: output, shape index: {}]  }
   0x1   :  { %9 = vsyncpa [#allocation7], 0 }
   0x2   :  { %10 = vsyncpa [#allocation5], 0  ;;  %s416_s12 = smov [#allocation3]  }
   0x3   :  { %s16_s13 = sshll.u32 %s416_s12, 4  ;;  %s17_s13 = int_to_ptr.vmem [resolvable:$true] %s16_s13 }
   0x4   :  { %s358_s14 = scalar_lea.vmem %s17_s13, 384  ;;  %p363_p1 = scmp.lt.s32.totalorder %s17_s13, %s17_s13 }
   0x5   :  { %p359_p0 = scmp.ne.s32.totalorder %s17_s13, %s358_s14  ;;  %p364_p2 = scmp.lt.s32.totalorder %s358_s14, %s358_s14 }
   0x7   :  { %p365_p3 = por %p364_p2, %p363_p1 }
   0x9   :  { %p366_p4 = pnand %p365_p3, %p359_p0 }
   0xb   :  { %369 = shalt.err (!%p366_p4)
}
   0xc   :  { %s417_s15 = smov 64   ;;  %s418_s16 = smov 4  }
   0xd   :  { %22 = dma.hbm_to_vmem [thread:$0]  %s460_s0, 384, %s17_s13, [#allocation4], %s417_s15, %s417_s15, %s418_s16  }
   0xe   :  { %s419_s19 = smov [#allocation6]  }
   0xf   :  { %s28_s20 = sshll.u32 %s419_s19, 4  ;;  %s29_s20 = int_to_ptr.vmem [resolvable:$true] %s28_s20 }
  0x10   :  { %s378_s21 = scalar_lea.vmem %s29_s20, 1024  ;;  %p383_p6 = scmp.lt.s32.totalorder %s29_s20, %s29_s20 }
  0x11   :  { %p379_p5 = scmp.ne.s32.totalorder %s29_s20, %s378_s21  ;;  %p384_p7 = scmp.lt.s32.totalorder %s378_s21, %s378_s21 }
  0x13   :  { %p385_p8 = por %p384_p7, %p383_p6 }
  0x15   :  { %p386_p9 = pnand %p385_p8, %p379_p5 }
  0x17   :  { %389 = shalt.err (!%p386_p9)
}
  0x18   :  { %34 = dma.hbm_to_vmem [thread:$0]  %s461_s1, 1024, %s29_s20, [#allocation7], %s417_s15, %s417_s15, %s418_s16  }
  0x19   :  { %410 = dma.done.wait [#allocation4], 384  }
  0x1a   :  { %411 = vsyncadd [#allocation4], 4294966912 }
  0x1b   :  { %412 = dma.done.wait [#allocation7], 1024  }
  0x1c   :  { %413 = vsyncadd [#allocation7], 4294966272  ;;  %v420_v0 = vmov 0.0   ;;  %vm421_vm0 = vmmov 0   ;;  %v339_v1 = vld [vmem:[#allocation6 + $0x38] sm:$0xff]   ;;  %v340_v2 = vld [vmem:[#allocation6 + $0x30] sm:$0xff]  }
  0x1d   :  { %314 = vmatprep.subr.bf16.mxu1 %v420_v0  ;;  %286 = vmatprep.subr.bf16.mxu0 %v420_v0  ;;  %v341_v3 = vld [vmem:[#allocation6 + $0x28] sm:$0xff]   ;;  %v342_v4 = vld [vmem:[#allocation6 + $0x20] sm:$0xff]   ;;  %v343_v5 = vld [vmem:[#allocation6 + $0x18] sm:$0xff]   ;;  %s422_s24 = smov [#allocation8]  }
  0x1e   :  { %306 = vmatprep.mubr.msk.bf16.mxu1 %vm421_vm0, %v420_v0  ;;  %302 = vmatprep.mubr.msk.bf16.mxu0 %vm421_vm0, %v420_v0  ;;  %v344_v6 = vld [vmem:[#allocation6 + $0x10] sm:$0xff]   ;;  %v345_v7 = vld [vmem:[#allocation6 + $0x8] sm:$0xff]   ;;  %v346_v8 = vld [vmem:[#allocation6] sm:$0xff]  }
  0x1f   :  { %322 = vmatpush3.bf16.msra.mxu1 %v339_v1  ;;  %287 = vmatpush3.bf16.msra.mxu0 %v339_v1  ;;  %v347_v9 = vld [vmem:[#allocation3 + $0x8] sm:$0xff]   ;;  %v348_v10 = vld [vmem:[#allocation3] sm:$0xff]   ;;  %v349_v11 = vld [vmem:[#allocation3 + $0x10] sm:$0xff]  }
  0x20   :  { %315 = vmatprep.subr.bf16.mxu1 %v420_v0  ;;  %288 = vmatprep.subr.bf16.mxu0 %v420_v0  ;;  %v274_v12 = vld [vmem:[%s462_s2] ss:$0 sm:$0xff]  ;;  %s250_s2 = sshll.u32 %s422_s24, 4  ;;  %s251_s2 = int_to_ptr.vmem [resolvable:$true] %s250_s2 }
  0x21   :  { %s390_s25 = scalar_lea.vmem %s251_s2, 768  ;;  %p395_p11 = scmp.lt.s32.totalorder %s251_s2, %s251_s2 }
  0x22   :  { %p391_p10 = scmp.ne.s32.totalorder %s251_s2, %s390_s25  ;;  %p396_p12 = scmp.lt.s32.totalorder %s390_s25, %s390_s25 }
  0x23   :  { %323 = vmatpush3.bf16.msra.mxu1 %v340_v2  ;;  %289 = vmatpush3.bf16.msra.mxu0 %v340_v2 }
  0x24   :  { %316 = vmatprep.subr.bf16.mxu1 %v420_v0  ;;  %290 = vmatprep.subr.bf16.mxu0 %v420_v0  ;;  %p397_p13 = por %p396_p12, %p395_p11 }
  0x26   :  { %p398_p0 = pnand %p397_p13, %p391_p10 }
  0x27   :  { %324 = vmatpush3.bf16.msra.mxu1 %v341_v3  ;;  %291 = vmatpush3.bf16.msra.mxu0 %v341_v3 }
  0x28   :  { %317 = vmatprep.subr.bf16.mxu1 %v420_v0  ;;  %292 = vmatprep.subr.bf16.mxu0 %v420_v0 }
  0x2b   :  { %325 = vmatpush3.bf16.msra.mxu1 %v342_v4  ;;  %293 = vmatpush3.bf16.msra.mxu0 %v342_v4 }
  0x2c   :  { %318 = vmatprep.subr.bf16.mxu1 %v420_v0  ;;  %294 = vmatprep.subr.bf16.mxu0 %v420_v0 }
  0x2f   :  { %326 = vmatpush3.bf16.msra.mxu1 %v343_v5  ;;  %295 = vmatpush3.bf16.msra.mxu0 %v343_v5 }
  0x30   :  { %319 = vmatprep.subr.bf16.mxu1 %v420_v0  ;;  %296 = vmatprep.subr.bf16.mxu0 %v420_v0 }
  0x33   :  { %327 = vmatpush3.bf16.msra.mxu1 %v344_v6  ;;  %297 = vmatpush3.bf16.msra.mxu0 %v344_v6 }
  0x34   :  { %320 = vmatprep.subr.bf16.mxu1 %v420_v0  ;;  %298 = vmatprep.subr.bf16.mxu0 %v420_v0 }
  0x37   :  { %328 = vmatpush3.bf16.msra.mxu1 %v345_v7  ;;  %299 = vmatpush3.bf16.msra.mxu0 %v345_v7 }
  0x38   :  { %321 = vmatprep.subr.bf16.mxu1 %v420_v0  ;;  %300 = vmatprep.subr.bf16.mxu0 %v420_v0 }
  0x3b   :  { %329 = vmatpush3.bf16.msra.mxu1 %v346_v8  ;;  %301 = vmatpush3.bf16.msra.mxu0 %v346_v8 }
  0x3e   :  { %307 = vmatmul.mubr.bf16.vlgmr.msra.gmra.mxu1 %v347_v9  ;;  %303 = vmatmul.mubr.bf16.vlgmr.msra.gmra.mxu0 %v348_v10 }
  0x3f   :  { %310 = vmatprep.mubr.msk.bf16.mxu1 %vm421_vm0, %v420_v0 }
  0x46   :  { %311 = vmatmul.mubr.bf16.gmra.mxu1 %v349_v11 }
  0xfe   :  { %v190_v13 = vpop.f32.mrf.mxu1  ;;  %v182_v14 = vpop.f32.mrf.mxu0 }
  0xff   :  { %v235_v15 = vadd.f32 %v274_v12, %v190_v13  ;;  %v233_v16 = vadd.f32 %v274_v12, %v182_v14 }
 0x100   :  { %v308_v17 = vpop.f32.mrf.mxu1  ;;  %v304_v18 = vpop.f32.mrf.mxu0 }
 0x101   :  { %241 = vst [vmem:[#allocation8 + $0x10] sm:$0xff] %v235_v15  ;;  %239 = vst [vmem:[#allocation8] sm:$0xff] %v233_v16 }
 0x102   :  { %v193_v19 = vpop.f32.mrf.mxu1  ;;  %v185_v20 = vpop.f32.mrf.mxu0 }
 0x103   :  { %v236_v21 = vadd.f32 %v274_v12, %v193_v19  ;;  %v234_v22 = vadd.f32 %v274_v12, %v185_v20 }
 0x104   :  { %v309_v23 = vpop.f32.mrf.mxu1  ;;  %v305_v24 = vpop.f32.mrf.mxu0 }
 0x105   :  { %242 = vst [vmem:[#allocation8 + $0x18] sm:$0xff] %v236_v21  ;;  %240 = vst [vmem:[#allocation8 + $0x8] sm:$0xff] %v234_v22 }
 0x106   :  { %v198_v25 = vpop.f32.mrf.mxu1 }
 0x107   :  { %v237_v26 = vadd.f32 %v274_v12, %v198_v25 }
 0x108   :  { %v312_v27 = vpop.f32.mrf.mxu1 }
 0x109   :  { %243 = vst [vmem:[#allocation8 + $0x20] sm:$0xff] %v237_v26 }
 0x10a   :  { %v201_v28 = vpop.f32.mrf.mxu1 }
 0x10b   :  { %v238_v29 = vadd.f32 %v274_v12, %v201_v28 }
 0x10c   :  { %v313_v30 = vpop.f32.mrf.mxu1 }
 0x10d   :  { %244 = vst [vmem:[#allocation8 + $0x28] sm:$0xff] %v238_v29 }
 0x10e   :  { %401 = shalt.err (!%p398_p0)
}
 0x10f   :  { %s423_s26 = smov 128   ;;  %s424_s27 = smov 8  }
 0x110   :  { %256 = dma.vmem_to_hbm [thread:$0]  %s251_s2, 768, %s463_s3, [#allocation5], %s423_s26, %s423_s26, %s424_s27  }
 0x111   :  { %414 = dma.done.wait [#allocation5], 768  }
 0x112   :  { %415 = vsyncadd [#allocation5], 4294966528 }
 0x113   :  { %260 = vsyncpa [#allocation4], 1 }
 0x114   :  { %261 = vsyncpa [#allocation7], 1 }
 0x115   :  { %262 = vsyncpa [#allocation5], 1 }

</bundles_post_ra>
